<compile_context>
chip_gen: v7x
topology: tpu7x:2x2x1
jax: 0.10.0
libtpu: 0.0.40
codegen_flags: <defaults>
</compile_context>

<pallas_src>
import math
from dataclasses import dataclass
from functools import partial

import jax
import jax.numpy as jnp
from jax.experimental import pallas as pl
from jax.experimental.pallas import tpu as pltpu


_VMEM_LIMIT = 32 * 1024 * 1024   # explicit scoped-VMEM budget; safe on v5e/v6e/v7x


# ----------------------------------------------------------------------------- helpers
def _pick(dim, target, align):
    """Largest tile <= target that evenly divides `dim` and is `align`-aligned.
    Falls back to the full dim, which is always a legal block shape."""
    t = min(target, dim)
    while t >= align:
        if dim % t == 0 and t % align == 0:
            return t
        t -= align
    return dim


def _gelu_tanh(x):
    # TODO(synk): HF BERT default act is exact erf-GELU; tanh approximation used for safe lowering.
    c = math.sqrt(2.0 / math.pi)
    return 0.5 * x * (1.0 + jnp.tanh(c * (x + 0.044715 * x * x * x)))


# ----------------------------------------------------------------------------- kernels
def linear_kernel(x_ref, w_ref, b_ref, o_ref, acc_ref, *, activation):
    k = pl.program_id(2)

    @pl.when(k == 0)
    def _():
        acc_ref[...] = jnp.zeros_like(acc_ref)

    # bf16 MXU inputs, f32 accumulation.
    acc_ref[...] += jnp.dot(
        x_ref[...].astype(jnp.bfloat16),
        w_ref[...],
        preferred_element_type=jnp.float32,
    )

    @pl.when(k == pl.num_programs(2) - 1)
    def _():
        y = acc_ref[...] + b_ref[...]          # epilogue in f32 accumulator
        if activation == "gelu":
            y = _gelu_tanh(y)
        o_ref[...] = y.astype(o_ref.dtype)


def layernorm_kernel(x_ref, g_ref, b_ref, o_ref, *, eps):
    x = x_ref[...]
    mu = jnp.mean(x, axis=-1, keepdims=True)
    var = jnp.mean((x - mu) * (x - mu), axis=-1, keepdims=True)
    o_ref[...] = (x - mu) * jax.lax.rsqrt(var + eps) * g_ref[...] + b_ref[...]


def add_layernorm_kernel(x_ref, r_ref, g_ref, b_ref, o_ref, *, eps):
    # fused residual add + LayerNorm (saves one HBM round trip per residual)
    x = x_ref[...] + r_ref[...]
    mu = jnp.mean(x, axis=-1, keepdims=True)
    var = jnp.mean((x - mu) * (x - mu), axis=-1, keepdims=True)
    o_ref[...] = (x - mu) * jax.lax.rsqrt(var + eps) * g_ref[...] + b_ref[...]


def attention_kernel(q_ref, k_ref, v_ref, m_ref, o_ref, m_sc, l_sc, acc_sc, *, scale):
    # Flash-style online softmax over kv tiles for one (batch, head) slice.
    kv = pl.program_id(1)

    @pl.when(kv == 0)
    def _():
        m_sc[...] = jnp.full(m_sc.shape, -1e30, m_sc.dtype)
        l_sc[...] = jnp.zeros(l_sc.shape, l_sc.dtype)
        acc_sc[...] = jnp.zeros(acc_sc.shape, acc_sc.dtype)

    q = q_ref[0].astype(jnp.bfloat16)                          # (Sq, dh)
    k = k_ref[0].astype(jnp.bfloat16)                          # (tk, dh)
    v = v_ref[0].astype(jnp.bfloat16)                          # (tk, dh)

    # scores / softmax stay in f32; only the MXU operands are bf16.
    s = jnp.dot(q, k.T, preferred_element_type=jnp.float32) * scale   # (Sq, tk)
    s = s + m_ref[0]                                           # additive key-padding mask (1, tk)

    m_prev = m_sc[...]
    m_new = jnp.maximum(m_prev, jnp.max(s, axis=-1, keepdims=True))
    alpha = jnp.exp(m_prev - m_new)
    p = jnp.exp(s - m_new)
    l_sc[...] = alpha * l_sc[...] + jnp.sum(p, axis=-1, keepdims=True)
    acc_sc[...] = alpha * acc_sc[...] + jnp.dot(
        p.astype(jnp.bfloat16), v, preferred_element_type=jnp.float32)
    m_sc[...] = m_new

    @pl.when(kv == pl.num_programs(1) - 1)
    def _():
        inv = pl.reciprocal(l_sc[...], approx=True)
        o_ref[...] = ((acc_sc[...] * inv)[None]).astype(o_ref.dtype)


def cross_entropy_kernel(logits_ref, labels_ref, loss_ref, cnt_ref, loss_acc, cnt_acc):
    i = pl.program_id(0)

    @pl.when(i == 0)
    def _():
        loss_acc[...] = jnp.zeros_like(loss_acc)
        cnt_acc[...] = jnp.zeros_like(cnt_acc)

    x = logits_ref[...]                      # (tn, V) f32
    lbl = labels_ref[...]                    # (tn, 1) int32, -100 = ignore
    m = jnp.max(x, axis=-1, keepdims=True)
    lse = jnp.log(jnp.sum(jnp.exp(x - m), axis=-1, keepdims=True)) + m
    col = jax.lax.broadcasted_iota(jnp.int32, x.shape, 1)
    onehot = (col == lbl).astype(x.dtype)
    tgt = jnp.sum(x * onehot, axis=-1, keepdims=True)
    valid = (lbl >= 0).astype(x.dtype)
    per = (lse - tgt) * valid
    loss_acc[...] += jnp.sum(per, axis=0, keepdims=True)[:, :1]
    cnt_acc[...] += jnp.sum(valid, axis=0, keepdims=True)[:, :1]

    @pl.when(i == pl.num_programs(0) - 1)
    def _():
        loss_ref[...] = loss_acc[...]
        cnt_ref[...] = cnt_acc[...]


# ----------------------------------------------------------------------------- kernel wrappers
def linear(x, w, b, activation=None):
    M, K = x.shape
    N = w.shape[1]
    tm = _pick(M, 256, 8)
    tn = _pick(N, 256, 128)
    tk = _pick(K, 512, 128)
    grid = (M // tm, N // tn, K // tk)
    return pl.pallas_call(
        partial(linear_kernel, activation=activation),
        out_shape=jax.ShapeDtypeStruct((M, N), jnp.float32),
        grid_spec=pltpu.PrefetchScalarGridSpec(
            num_scalar_prefetch=0,
            grid=grid,
            in_specs=[
                pl.BlockSpec((tm, tk), lambda i, j, k: (i, k)),
                pl.BlockSpec((tk, tn), lambda i, j, k: (k, j)),
                pl.BlockSpec((1, tn), lambda i, j, k: (0, j)),
            ],
            out_specs=pl.BlockSpec((tm, tn), lambda i, j, k: (i, j)),
            scratch_shapes=[pltpu.VMEM((tm, tn), jnp.float32)],
        ),
        compiler_params=pltpu.CompilerParams(
            dimension_semantics=("parallel", "parallel", "arbitrary"),
            vmem_limit_bytes=_VMEM_LIMIT,
        ),
    )(x, w.astype(jnp.bfloat16), b.reshape(1, N))


def layernorm(x, g, b, residual=None, eps=1e-12):
    M, H = x.shape
    tm = _pick(M, 256, 8)
    grid = (M // tm,)
    row_spec = pl.BlockSpec((tm, H), lambda i: (i, 0))
    par_spec = pl.BlockSpec((1, H), lambda i: (0, 0))
    if residual is None:
        kernel = partial(layernorm_kernel, eps=eps)
        in_specs = [row_spec, par_spec, par_spec]
        args = (x, g.reshape(1, H), b.reshape(1, H))
    else:
        kernel = partial(add_layernorm_kernel, eps=eps)
        in_specs = [row_spec, row_spec, par_spec, par_spec]
        args = (x, residual, g.reshape(1, H), b.reshape(1, H))
    return pl.pallas_call(
        kernel,
        out_shape=jax.ShapeDtypeStruct((M, H), jnp.float32),
        grid_spec=pltpu.PrefetchScalarGridSpec(
            num_scalar_prefetch=0, grid=grid,
            in_specs=in_specs, out_specs=row_spec),
        compiler_params=pltpu.CompilerParams(
            dimension_semantics=("parallel",),
            vmem_limit_bytes=_VMEM_LIMIT,
        ),
    )(*args)


def attention(q, k, v, add_mask, nh, scale):
    # q, k, v: (B*nh, S, dh); add_mask: (B, 1, Sk) additive f32 (broadcast in-kernel).
    BH, Sq, Dh = q.shape
    Sk = k.shape[1]
    tk = _pick(Sk, 512, 128)
    nkv = Sk // tk
    return pl.pallas_call(
        partial(attention_kernel, scale=scale),
        out_shape=jax.ShapeDtypeStruct((BH, Sq, Dh), jnp.float32),
        grid_spec=pltpu.PrefetchScalarGridSpec(
            num_scalar_prefetch=0,
            grid=(BH, nkv),
            in_specs=[
                pl.BlockSpec((1, Sq, Dh), lambda bh, kv: (bh, 0, 0)),
                pl.BlockSpec((1, tk, Dh), lambda bh, kv: (bh, kv, 0)),
                pl.BlockSpec((1, tk, Dh), lambda bh, kv: (bh, kv, 0)),
                pl.BlockSpec((1, 1, tk), lambda bh, kv: (bh // nh, 0, kv)),
            ],
            out_specs=pl.BlockSpec((1, Sq, Dh), lambda bh, kv: (bh, 0, 0)),
            scratch_shapes=[
                pltpu.VMEM((Sq, 1), jnp.float32),
                pltpu.VMEM((Sq, 1), jnp.float32),
                pltpu.VMEM((Sq, Dh), jnp.float32),
            ],
        ),
        compiler_params=pltpu.CompilerParams(
            dimension_semantics=("parallel", "arbitrary"),
            vmem_limit_bytes=_VMEM_LIMIT,
        ),
    )(q, k, v, add_mask)


def cross_entropy(logits, labels):
    N, V = logits.shape
    tn = _pick(N, 256, 8)
    grid = (N // tn,)
    out_spec = pl.BlockSpec((1, 1), lambda i: (0, 0))
    loss_sum, cnt = pl.pallas_call(
        cross_entropy_kernel,
        out_shape=(
            jax.ShapeDtypeStruct((1, 1), jnp.float32),
            jax.ShapeDtypeStruct((1, 1), jnp.float32),
        ),
        grid_spec=pltpu.PrefetchScalarGridSpec(
            num_scalar_prefetch=0, grid=grid,
            in_specs=[
                pl.BlockSpec((tn, V), lambda i: (i, 0)),
                pl.BlockSpec((tn, 1), lambda i: (i, 0)),
            ],
            out_specs=[out_spec, out_spec],
            scratch_shapes=[pltpu.VMEM((1, 1), jnp.float32),
                            pltpu.VMEM((1, 1), jnp.float32)],
        ),
        compiler_params=pltpu.CompilerParams(
            dimension_semantics=("arbitrary",),
            vmem_limit_bytes=_VMEM_LIMIT,
        ),
    )(logits, labels)
    return loss_sum[0, 0], cnt[0, 0]


# ----------------------------------------------------------------------------- model
@dataclass
class TokenizerParams:
    pad_index: int
    cls_index: int
    mask_index: int
    vocab_size: int


def init_params(key, cfg):
    V, H, I, L, P = cfg["vocab"], cfg["hidden"], cfg["inter"], cfg["layers"], cfg["max_pos"]
    keys = iter(jax.random.split(key, 512))

    def dense(din, dout):
        return (0.02 * jax.random.normal(next(keys), (din, dout), jnp.float32),
                jnp.zeros((dout,), jnp.float32))

    params = {}
    params["word_emb"] = 0.02 * jax.random.normal(next(keys), (V, H), jnp.float32)
    # init_codebook(): overwrite leading rows of word embeddings with a deterministic "codebook"
    # (stands in for torch.load(codebook.pt)).
    codebook = 0.02 * jax.random.normal(next(keys), (V // 2, H), jnp.float32)
    params["word_emb"] = params["word_emb"].at[: V // 2].set(codebook)
    params["pos_emb"] = 0.02 * jax.random.normal(next(keys), (P, H), jnp.float32)
    params["type_emb"] = 0.02 * jax.random.normal(next(keys), (2, H), jnp.float32)
    params["emb_ln_g"] = jnp.ones((H,), jnp.float32)
    params["emb_ln_b"] = jnp.zeros((H,), jnp.float32)

    layers = []
    for _ in range(L):
        p = {}
        for pref in ("self_", "cross_"):
            for nm in ("q", "k", "v", "o"):
                w, b = dense(H, H)
                p[pref + nm + "_w"], p[pref + nm + "_b"] = w, b
            p[pref + "ln_g"] = jnp.ones((H,), jnp.float32)
            p[pref + "ln_b"] = jnp.zeros((H,), jnp.float32)
        w, b = dense(H, I)
        p["inter_w"], p["inter_b"] = w, b
        w, b = dense(I, H)
        p["out_w"], p["out_b"] = w, b
        p["out_ln_g"] = jnp.ones((H,), jnp.float32)
        p["out_ln_b"] = jnp.zeros((H,), jnp.float32)
        layers.append(p)
    params["layers"] = layers

    w, b = dense(H, H)
    params["mlm_dense_w"], params["mlm_dense_b"] = w, b
    params["mlm_ln_g"] = jnp.ones((H,), jnp.float32)
    params["mlm_ln_b"] = jnp.zeros((H,), jnp.float32)
    # decoder weight is live-tied to word_emb at forward time (HF default weight tying)
    params["decoder_b"] = jnp.zeros((V,), jnp.float32)
    return params


def mask_for_mlm(key, input_ids, labels, mlm_prob, tok: TokenizerParams):
    k1, k2, k3, k4 = jax.random.split(key, 4)
    masked = jax.random.bernoulli(k1, mlm_prob, input_ids.shape)
    masked = masked & (input_ids != tok.pad_index) & (input_ids != tok.cls_index)
    labels = jnp.where(masked, labels, -100)
    replaced = jax.random.bernoulli(k2, 0.8, input_ids.shape) & masked
    input_ids = jnp.where(replaced, tok.mask_index, input_ids)
    indices_random = jax.random.bernoulli(k3, 0.5, input_ids.shape) & masked & (~replaced)
    random_words = jax.random.randint(k4, input_ids.shape, 0, tok.vocab_size)
    input_ids = jnp.where(indices_random, random_words, input_ids)
    return input_ids, labels


def _attn_block(x_q, x_kv, add_mask, p, Bq, Sq, Bk, Sk, nh, dh, prefix, self_attn):
    H = nh * dh
    if self_attn:
        # fused QKV projection: one matmul reads the activation once.
        qkv_w = jnp.concatenate([p[prefix + "q_w"], p[prefix + "k_w"], p[prefix + "v_w"]], axis=1)
        qkv_b = jnp.concatenate([p[prefix + "q_b"], p[prefix + "k_b"], p[prefix + "v_b"]])
        qkv = linear(x_q, qkv_w, qkv_b)
        q, k, v = qkv[:, :H], qkv[:, H:2 * H], qkv[:, 2 * H:]
    else:
        # cross-attention: Q from decoder stream, fused KV from the context.
        q = linear(x_q, p[prefix + "q_w"], p[prefix + "q_b"])
        kv_w = jnp.concatenate([p[prefix + "k_w"], p[prefix + "v_w"]], axis=1)
        kv_b = jnp.concatenate([p[prefix + "k_b"], p[prefix + "v_b"]])
        kv = linear(x_kv, kv_w, kv_b)
        k, v = kv[:, :H], kv[:, H:]

    def split(t, B, S):
        # TODO(synk): head split/merge still transposes in XLA; could be folded into the
        # attention BlockSpecs for a further HBM-traffic win.
        return t.reshape(B, S, nh, dh).transpose(0, 2, 1, 3).reshape(B * nh, S, dh)

    o = attention(split(q, Bq, Sq), split(k, Bk, Sk), split(v, Bk, Sk),
                  add_mask, nh, 1.0 / math.sqrt(dh))
    o = o.reshape(Bq, nh, Sq, dh).transpose(0, 2, 1, 3).reshape(Bq * Sq, H)
    o = linear(o, p[prefix + "o_w"], p[prefix + "o_b"])
    # fused residual + LayerNorm
    return layernorm(o, p[prefix + "ln_g"], p[prefix + "ln_b"], residual=x_q)


def bert_mlm_forward(params, input_ids, attention_mask, labels, context, context_mask, cfg):
    B, S = input_ids.shape
    H, nh = cfg["hidden"], cfg["heads"]
    dh = H // nh
    Sc = context.shape[1]

    # --- embeddings (word + position + token_type) -> LayerNorm ---
    x = (jnp.take(params["word_emb"], input_ids, axis=0)
         + params["pos_emb"][:S][None, :, :]
         + params["type_emb"][0][None, None, :])
    x = layernorm(x.reshape(B * S, H), params["emb_ln_g"], params["emb_ln_b"])

    # --- additive key-padding masks, (B, 1, Sk); broadcast to (heads, queries) in-kernel ---
    self_mask = ((1.0 - attention_mask.astype(jnp.float32)) * -1e9).reshape(B, 1, S)
    cross_mask = ((1.0 - context_mask.astype(jnp.float32)) * -1e9).reshape(B, 1, Sc)

    ctx = context.reshape(B * Sc, H)

    # --- transformer layers: self-attn, cross-attn (encoder_hidden_states), FFN ---
    for p in params["layers"]:
        x = _attn_block(x, x, self_mask, p, B, S, B, S, nh, dh, "self_", True)
        x = _attn_block(x, ctx, cross_mask, p, B, S, B, Sc, nh, dh, "cross_", False)
        h = linear(x, p["inter_w"], p["inter_b"], activation="gelu")
        h = linear(h, p["out_w"], p["out_b"])
        x = layernorm(h, p["out_ln_g"], p["out_ln_b"], residual=x)

    # --- MLM head: dense + gelu + LayerNorm + tied decoder ---
    h = linear(x, params["mlm_dense_w"], params["mlm_dense_b"], activation="gelu")
    h = layernorm(h, params["mlm_ln_g"], params["mlm_ln_b"])
    logits = linear(h, params["word_emb"].T, params["decoder_b"])            # (B*S, V), live tie

    loss_sum, cnt = cross_entropy(logits, labels.reshape(-1, 1).astype(jnp.int32))
    loss = loss_sum / jnp.maximum(cnt, 1.0)
    return loss, logits.reshape(B, S, -1)


def motion_bert_forward(params, input_ids, attention_mask, labels, context, context_mask,
                        cfg, tok, mlm_probability, rng, cond_drop_prob=0.0):
    # cond_drop_prob = 0.0 (and eval mode) -> no context-mask dropout branch.
    input_ids, labels = mask_for_mlm(rng, input_ids, labels, mlm_probability, tok)
    return bert_mlm_forward(params, input_ids, attention_mask, labels, context, context_mask, cfg)


# ----------------------------------------------------------------------------- main
if __name__ == "__main__":
    cfg = dict(vocab=64, hidden=32, inter=64, layers=2, heads=4, max_pos=64)
    tok = TokenizerParams(pad_index=0, cls_index=1, mask_index=2, vocab_size=cfg["vocab"])
    B, S, Sc = 2, 8, 8

    key = jax.random.PRNGKey(0)
    k_param, k_ids, k_ctx, k_mlm = jax.random.split(key, 4)

    params = init_params(k_param, cfg)

    input_ids = jax.random.randint(k_ids, (B, S), 3, cfg["vocab"], dtype=jnp.int32)
    input_ids = input_ids.at[:, 0].set(tok.cls_index)
    labels = input_ids
    attention_mask = jnp.ones((B, S), jnp.int32)
    context = 0.1 * jax.random.normal(k_ctx, (B, Sc, cfg["hidden"]), jnp.float32)
    context_mask = jnp.ones((B, Sc), jnp.int32)

    loss, logits = motion_bert_forward(
        params, input_ids, attention_mask, labels, context, context_mask,
        cfg, tok, mlm_probability=0.15, rng=k_mlm, cond_drop_prob=0.0)

    jax.block_until_ready((loss, logits))
    assert logits.shape == (B, S, cfg["vocab"])
    assert jnp.isfinite(loss)
    print("KERNEL_OK")
</pallas_src>

<mosaic_0001>
module attributes {stable_mosaic.version = 11 : i64} {
  func.func @layernorm_kernel(%arg0: i32, %arg1: memref<16x32xf32, #tpu.memory_space<vmem>>, %arg2: memref<1x32xf32, #tpu.memory_space<vmem>>, %arg3: memref<1x32xf32, #tpu.memory_space<vmem>>, %arg4: memref<16x32xf32, #tpu.memory_space<vmem>>) attributes {dimension_semantics = [#tpu.dimension_semantics<parallel>], iteration_bounds = array<i64: 1>, scalar_prefetch = 0 : i64, scratch_operands = 0 : i64, tpu.core_type = #tpu.core_type<tc>, window_params = [{transform_indices = @transform_0, window_bounds = array<i64: 16, 32>}, {pipeline_mode = #tpu.pipeline_mode<synchronous>, transform_indices = @transform_1, window_bounds = array<i64: 1, 32>}, {pipeline_mode = #tpu.pipeline_mode<synchronous>, transform_indices = @transform_2, window_bounds = array<i64: 1, 32>}, {transform_indices = @transform_3, window_bounds = array<i64: 16, 32>}]} {
    %c0 = arith.constant 0 : index
    %c0_0 = arith.constant 0 : index
    %0 = vector.load %arg1[%c0, %c0_0] : memref<16x32xf32, #tpu.memory_space<vmem>>, vector<16x32xf32>
    %cst = arith.constant dense<0.000000e+00> : vector<16xf32>
    %1 = vector.multi_reduction <add>, %0, %cst [1] : vector<16x32xf32> to vector<16xf32>
    %2 = vector.shape_cast %1 : vector<16xf32> to vector<16x1xf32>
    %cst_1 = arith.constant 3.200000e+01 : f32
    %3 = vector.broadcast %cst_1 : f32 to vector<16x1xf32>
    %4 = arith.divf %2, %3 : vector<16x1xf32>
    %5 = vector.broadcast %4 : vector<16x1xf32> to vector<16x32xf32>
    %6 = arith.subf %0, %5 : vector<16x32xf32>
    %7 = vector.broadcast %4 : vector<16x1xf32> to vector<16x32xf32>
    %8 = arith.subf %0, %7 : vector<16x32xf32>
    %9 = arith.mulf %6, %8 : vector<16x32xf32>
    %cst_2 = arith.constant dense<0.000000e+00> : vector<16xf32>
    %10 = vector.multi_reduction <add>, %9, %cst_2 [1] : vector<16x32xf32> to vector<16xf32>
    %11 = vector.shape_cast %10 : vector<16xf32> to vector<16x1xf32>
    %cst_3 = arith.constant 3.200000e+01 : f32
    %12 = vector.broadcast %cst_3 : f32 to vector<16x1xf32>
    %13 = arith.divf %11, %12 : vector<16x1xf32>
    %14 = vector.broadcast %4 : vector<16x1xf32> to vector<16x32xf32>
    %15 = arith.subf %0, %14 : vector<16x32xf32>
    %cst_4 = arith.constant 9.99999996E-13 : f32
    %16 = vector.broadcast %cst_4 : f32 to vector<16x1xf32>
    %17 = arith.addf %13, %16 : vector<16x1xf32>
    %18 = math.rsqrt %17 : vector<16x1xf32>
    %19 = vector.broadcast %18 : vector<16x1xf32> to vector<16x32xf32>
    %20 = arith.mulf %15, %19 : vector<16x32xf32>
    %c0_5 = arith.constant 0 : index
    %c0_6 = arith.constant 0 : index
    %21 = vector.load %arg2[%c0_5, %c0_6] : memref<1x32xf32, #tpu.memory_space<vmem>>, vector<1x32xf32>
    %22 = vector.broadcast %21 : vector<1x32xf32> to vector<16x32xf32>
    %23 = arith.mulf %20, %22 : vector<16x32xf32>
    %c0_7 = arith.constant 0 : index
    %c0_8 = arith.constant 0 : index
    %24 = vector.load %arg3[%c0_7, %c0_8] : memref<1x32xf32, #tpu.memory_space<vmem>>, vector<1x32xf32>
    %25 = vector.broadcast %24 : vector<1x32xf32> to vector<16x32xf32>
    %26 = arith.addf %23, %25 : vector<16x32xf32>
    %c0_9 = arith.constant 0 : index
    %c0_10 = arith.constant 0 : index
    %27 = vector.load %arg4[%c0_9, %c0_10] : memref<16x32xf32, #tpu.memory_space<vmem>>, vector<16x32xf32>
    tpu.vector_store %arg4[%c0_9, %c0_10], %26 {strides = array<i32>} : memref<16x32xf32, #tpu.memory_space<vmem>>, vector<16x32xf32>,
    return
  }
  func.func @transform_0(%arg0: i32) -> (i32, i32) {
    %c0_i32 = arith.constant 0 : i32
    %c0_i32_0 = arith.constant 0 : i32
    return %arg0, %c0_i32 : i32, i32
  }
  func.func @transform_1(%arg0: i32) -> (i32, i32) {
    %c0_i32 = arith.constant 0 : i32
    %c0_i32_0 = arith.constant 0 : i32
    %c0_i32_1 = arith.constant 0 : i32
    return %c0_i32, %c0_i32_0 : i32, i32
  }
  func.func @transform_2(%arg0: i32) -> (i32, i32) {
    %c0_i32 = arith.constant 0 : i32
    %c0_i32_0 = arith.constant 0 : i32
    %c0_i32_1 = arith.constant 0 : i32
    return %c0_i32, %c0_i32_0 : i32, i32
  }
  func.func @transform_3(%arg0: i32) -> (i32, i32) {
    %c0_i32 = arith.constant 0 : i32
    %c0_i32_0 = arith.constant 0 : i32
    return %arg0, %c0_i32 : i32, i32
  }
}

</mosaic_0001>

<bundles_post_ra>
// kernel: tpu_custom_call.1
= control target key start
LH: loop header
LB: loop body
LE: loop exit
PB: predicated region body
PF: predicated region fallthrough
CT: control target
= control target key end

     0   :  { %8 = vsyncpa [#allocation3], 0  ;;  %s220_s0 = inlined_call_operand.hbm [shape: f32[16,32], index: 0, kind: input, shape index: {}]   ;;  %s221_s1 = inlined_call_operand.vmem [shape: f32[1,32], index: 1, kind: input, shape index: {}]   ;;  %s222_s2 = inlined_call_operand.vmem [shape: f32[1,32], index: 2, kind: input, shape index: {}]   ;;  %s223_s3 = inlined_call_operand.hbm [shape: f32[16,32], index: 3, kind: output, shape index: {}]  }
   0x1   :  { %9 = vsyncpa [#allocation4], 0  ;;  %s154_s12 = smov [#allocation2]   ;;  %s106_s16 = scalar_lea.hbm %s220_s0, 256 }
   0x2   :  { %s15_s13 = sshll.u32 %s154_s12, 4  ;;  %p107_p0 = scmp.ne.s32.totalorder %s220_s0, %s106_s16  ;;  %s16_s13 = int_to_ptr.vmem [resolvable:$true] %s15_s13 }
   0x3   :  { %p110_p1 = scmp.lt.u32.totalorder %s106_s16, %s220_s0 }
   0x5   :  { %p112_p2 = pnand %p110_p1, %p107_p0 }
   0x7   :  { %115 = shalt.err (!%p112_p2)
}
   0x8   :  { %s116_s21 = scalar_lea.vmem %s16_s13, 256  ;;  %p121_p4 = scmp.lt.s32.totalorder %s16_s13, %s16_s13 }
   0x9   :  { %p117_p3 = scmp.ne.s32.totalorder %s16_s13, %s116_s21  ;;  %p122_p5 = scmp.lt.s32.totalorder %s116_s21, %s116_s21 }
   0xb   :  { %p123_p6 = por %p122_p5, %p121_p4 }
   0xd   :  { %p124_p7 = pnand %p123_p6, %p117_p3 }
   0xf   :  { %127 = shalt.err (!%p124_p7)
}
  0x10   :  { %s155_s22 = smov 128   ;;  %s156_s23 = smov 8  }
  0x11   :  { %21 = dma.hbm_to_vmem [thread:$0]  %s220_s0, 256, %s16_s13, [#allocation3], %s155_s22, %s155_s22, %s156_s23  }
  0x12   :  { %150 = dma.done.wait [#allocation3], 256  }
  0x13   :  { %151 = vsyncadd [#allocation3], 4294967040  ;;  %vm31_vm0 = vcmask 261120   ;;  %v29_v0 = vld [vmem:[#allocation2] sm:$0xff]  ;;  %v30_v1 = vld [vmem:[#allocation2 + $0x8] sm:$0xff]  ;;  %s157_s29 = smov [#allocation5]  }
  0x14   :  { %v32_v2 = vsel %vm31_vm0, %v29_v0, 0.0  ;;  %v35_v3 = vsel %vm31_vm0, %v30_v1, 0.0  ;;  %v96_v21 = vld [vmem:[%s221_s1] ss:$0 sm:$0xff]  ;;  %s84_s30 = sshll.u32 %s157_s29, 4  ;;  %s85_s30 = int_to_ptr.vmem [resolvable:$true] %s84_s30 }
  0x15   :  { %33 = vadd.xlane.f32.xlu0 %v32_v2  ;;  %v97_v23 = vld [vmem:[%s222_s2] ss:$0 sm:$0xff]  ;;  %s128_s4 = scalar_lea.vmem %s85_s30, 256  ;;  %p133_p9 = scmp.lt.s32.totalorder %s85_s30, %s85_s30 }
  0x16   :  { %p129_p8 = scmp.ne.s32.totalorder %s85_s30, %s128_s4  ;;  %p134_p10 = scmp.lt.s32.totalorder %s128_s4, %s128_s4 }
  0x18   :  { %p135_p11 = por %p134_p10, %p133_p9 }
  0x19   :  { %36 = vadd.xlane.f32.xlu0 %v35_v3 }
  0x1a   :  { %p136_p12 = pnand %p135_p11, %p129_p8 }
  0xa2   :  { %v34_v4 = vpop.xlane.xlu0 %33 }
  0xa3   :  { %v39_v5 = vmul.f32 0.03125, %v34_v4 }
  0xa5   :  { %v41_v6 = vsub.f32 %v29_v0, %v39_v5 }
  0xa6   :  { %v37_v7 = vpop.xlane.xlu0 %36 }
  0xa7   :  { %v40_v8 = vmul.f32 0.03125, %v37_v7  ;;  %v43_v9 = vmul.f32 %v41_v6, %v41_v6 }
  0xa9   :  { %v42_v10 = vsub.f32 %v30_v1, %v40_v8  ;;  %v45_v11 = vsel %vm31_vm0, %v43_v9, 0.0 }
  0xaa   :  { %46 = vadd.xlane.f32.xlu1 %v45_v11 }
  0xab   :  { %v44_v12 = vmul.f32 %v42_v10, %v42_v10 }
  0xad   :  { %v48_v13 = vsel %vm31_vm0, %v44_v12, 0.0 }
  0xae   :  { %49 = vadd.xlane.f32.xlu1 %v48_v13 }
 0x137   :  { %v47_v14 = vpop.xlane.xlu1 %46 }
 0x138   :  { %v51_v15 = vmul.f32 0.03125, %v47_v14 }
 0x13a   :  { %v53_v16 = vadd.f32 1e-12, %v51_v15 }
 0x13b   :  { %v50_v17 = vpop.xlane.xlu1 %49 }
 0x13c   :  { %102 = vrsqrt.f32 %v53_v16  ;;  %v52_v18 = vmul.f32 0.03125, %v50_v17 }
 0x13e   :  { %v54_v19 = vadd.f32 1e-12, %v52_v18 }
 0x140   :  { %104 = vrsqrt.f32 %v54_v19 }
 0x146   :  { %v103_v20 = vpop.eup %102 }
 0x147   :  { %v57_v22 = vmul.f32 %v103_v20, %v41_v6 }
 0x149   :  { %v66_v24 = vmul.f32 %v96_v21, %v57_v22 }
 0x14a   :  { %v105_v25 = vpop.eup %104 }
 0x14b   :  { %v58_v26 = vmul.f32 %v105_v25, %v42_v10  ;;  %v75_v27 = vadd.f32 %v97_v23, %v66_v24 }
 0x14d   :  { %v67_v28 = vmul.f32 %v96_v21, %v58_v26  ;;  %77 = vst.msk [vmem:[#allocation5] sm:$0xff] %vm31_vm0, %v75_v27 }
 0x14f   :  { %v76_v29 = vadd.f32 %v97_v23, %v67_v28 }
 0x151   :  { %78 = vst.msk [vmem:[#allocation5 + $0x8] sm:$0xff] %vm31_vm0, %v76_v29 }
 0x152   :  { %139 = shalt.err (!%p136_p12)
}
 0x153   :  { %s140_s5 = scalar_lea.hbm %s223_s3, 256 }
 0x154   :  { %p141_p13 = scmp.ne.s32.totalorder %s223_s3, %s140_s5  ;;  %p144_p0 = scmp.lt.u32.totalorder %s140_s5, %s223_s3 }
 0x156   :  { %p146_p1 = pnand %p144_p0, %p141_p13 }
 0x158   :  { %149 = shalt.err (!%p146_p1)
}
 0x159   :  { %90 = dma.vmem_to_hbm [thread:$0]  %s85_s30, 256, %s223_s3, [#allocation4], %s155_s22, %s155_s22, %s156_s23  }
 0x15a   :  { %152 = dma.done.wait [#allocation4], 256  }
 0x15b   :  { %153 = vsyncadd [#allocation4], 4294967040 }
 0x15c   :  { %94 = vsyncpa [#allocation3], 1 }
 0x15d   :  { %95 = vsyncpa [#allocation4], 1 }

</bundles_post_ra>
